<compile_context>
chip_gen: v5e
topology: v5e:2x2
jax: 0.10.0
libtpu: 0.0.40
codegen_flags: <defaults>
</compile_context>

<pallas_src>
import jax
import jax.numpy as jnp
from jax.experimental import pallas as pl
from jax.experimental.pallas import tpu as pltpu


# ----------------------------------------------------------------------------
# Pallas kernel: one (tile_m, 4*Cin) x (4*Cin, 4*Cout) matmul + bias
# ----------------------------------------------------------------------------
def _fused_upsample_matmul_kernel(p_ref, w_ref, b_ref, o_ref):
    """p_ref : (tile_m, 4*Cin)  bf16 phase-decomposed input patches.
    w_ref : (4*Cin, 4*Cout) bf16 pre-composed (convT tap x 1x1) weights.
    b_ref : (1, 4*Cout)     f32 effective bias (replicated per output phase).
    o_ref : (tile_m, 4*Cout) f32 phase-concatenated output rows (lane-dense).
    """
    acc = jnp.dot(p_ref[...], w_ref[...], preferred_element_type=jnp.float32)
    o_ref[...] = (acc + b_ref[...]).astype(o_ref.dtype)


# ----------------------------------------------------------------------------
# Wrapper
# ----------------------------------------------------------------------------
def upsample_block_forward(x_nchw, params, scale_factor=2):
    """Forward pass of `upsample_block` (default scale_factor=2 path).

    x_nchw : (N, Cin, H, W) float32 (PyTorch layout).
    params : (wt, bt, w1, b1) with PyTorch shapes
             wt (Cin, Cin, 3, 3), bt (Cin,), w1 (Cout, Cin, 1, 1), b1 (Cout,).
    returns (N, Cout, 2H, 2W) float32.
    """
    if scale_factor != 2:
        # TODO(synk): F.interpolate ('bilinear'/'nearest') path for
        # scale_factor != 2 is not implemented; the module's default
        # (scale_factor=2) uses the ConvTranspose2d path implemented here.
        raise NotImplementedError("only scale_factor == 2 is implemented")

    wt, bt, w1, b1 = params
    N, Cin, H, W = x_nchw.shape
    Cout = w1.shape[0]
    hp = jax.lax.Precision.HIGHEST

    # ---- weight pre-composition (tiny, exact f32, once per call) ----------
    # ConvTranspose2d: y[co, 2p-1+kh, 2q-1+kw] += x[ci,p,q] * wt[ci,co,kh,kw]
    # Conv2d 1x1     : out[o] = sum_co y[co] * w1[o,co] + b1[o]
    # => effective per-tap matrices We[kh, kw] of shape (Cin, Cout).
    w1m = w1.reshape(Cout, Cin)
    We = jnp.einsum("ickl,oc->klio", wt, w1m, precision=hp)     # (3,3,Cin,Cout)
    b_eff = b1 + jnp.einsum("oc,c->o", w1m, bt, precision=hp)   # (Cout,)

    zeros = jnp.zeros((Cin, Cout), jnp.float32)

    def cat(ee, eo, oe, oo):                                    # (Cin, 4*Cout)
        return jnp.concatenate([ee, eo, oe, oo], axis=1)

    # Output pixel (2p+dh, 2q+dw); column blocks ordered [ee | eo | oe | oo];
    # row blocks (K axis) ordered [x(p,q) | x(p,q+1) | x(p+1,q) | x(p+1,q+1)].
    w_taps = jnp.stack(
        [
            cat(We[1, 1], We[1, 2], We[2, 1], We[2, 2]),  # from x[p,   q  ]
            cat(zeros,    We[1, 0], zeros,    We[2, 0]),  # from x[p,   q+1]
            cat(zeros,    zeros,    We[0, 1], We[0, 2]),  # from x[p+1, q  ]
            cat(zeros,    zeros,    zeros,    We[0, 0]),  # from x[p+1, q+1]
        ],
        axis=0,
    )                                                           # (4, Cin, 4*Cout)
    K = 4 * Cin
    C4 = 4 * Cout
    w_flat = w_taps.reshape(K, C4).astype(jnp.bfloat16)         # (256, 128)
    b_cat = jnp.tile(b_eff, 4)[None, :].astype(jnp.float32)     # (1, 4*Cout)

    # ---- input: build the lane-dense 4-tap patch operand in the wrapper ----
    # (transpose + halo pad + 4 shifted slices + concat + bf16 cast fuse into
    #  one XLA producer fusion; nothing is relayouted inside the kernel.)
    x_nhwc = jnp.transpose(x_nchw, (0, 2, 3, 1)).astype(jnp.float32)
    xp = jnp.pad(x_nhwc, ((0, 0), (0, 1), (0, 1), (0, 0)))      # (N,H+1,W+1,Cin)
    patches = jnp.concatenate(
        [
            xp[:, :H, :W, :],        # x[p,   q  ]
            xp[:, :H, 1:, :],        # x[p,   q+1]
            xp[:, 1:, :W, :],        # x[p+1, q  ]
            xp[:, 1:, 1:, :],        # x[p+1, q+1]
        ],
        axis=-1,
    ).astype(jnp.bfloat16)                                      # (N,H,W,4*Cin)
    M_total = N * H * W
    patches = patches.reshape(M_total, K)                       # (512, 256)

    # ---- grid: 2 parallel M-tiles when the shape allows it -----------------
    # (fills both v7x TensorCores; on single-TC v5e/v6e it is 2 short
    #  pipelined steps -- negligible overhead at this size.)
    if M_total % 2 == 0 and (M_total // 2) % 16 == 0:
        num_m_tiles = 2
    else:
        num_m_tiles = 1
    tile_m = M_total // num_m_tiles

    cost = pl.CostEstimate(
        # Structural FLOPs; ~9/16 of the K blocks are non-zero (advisory only).
        flops=2 * M_total * K * C4,
        transcendentals=0,
        bytes_accessed=(2 * (patches.size + w_flat.size)        # bf16 operands
                        + 4 * (b_cat.size + M_total * C4)),     # f32 bias+out
    )

    out = pl.pallas_call(
        _fused_upsample_matmul_kernel,
        out_shape=jax.ShapeDtypeStruct((M_total, C4), jnp.float32),
        grid=(num_m_tiles,),
        in_specs=[
            pl.BlockSpec((tile_m, K), lambda i: (i, 0)),
            pl.BlockSpec((K, C4), lambda i: (0, 0)),
            pl.BlockSpec((1, C4), lambda i: (0, 0)),
        ],
        out_specs=pl.BlockSpec((tile_m, C4), lambda i: (i, 0)),
        compiler_params=pltpu.CompilerParams(
            dimension_semantics=("parallel",)),
        cost_estimate=cost,
    )(patches, w_flat, b_cat)

    # ---- phase de-interleave: layout plumbing on the small final output ----
    out = out.reshape(N, H, W, 2, 2, Cout)          # (n, p, q, dh, dw, c)
    out = out.transpose(0, 1, 3, 2, 4, 5)           # (n, p, dh, q, dw, c)
    out = out.reshape(N, 2 * H, 2 * W, Cout)
    return jnp.transpose(out, (0, 3, 1, 2))         # NHWC -> NCHW


# ----------------------------------------------------------------------------
# Pure-JAX reference (for correctness checking) and parameter init
# ----------------------------------------------------------------------------
def reference_upsample_block(x_nchw, wt, bt, w1, b1):
    hp = jax.lax.Precision.HIGHEST
    # ConvTranspose2d == lhs-dilated conv with flipped, in/out-swapped kernel.
    w_conv = jnp.transpose(wt[:, :, ::-1, ::-1], (1, 0, 2, 3))
    y = jax.lax.conv_general_dilated(
        x_nchw, w_conv, window_strides=(1, 1), padding=((1, 2), (1, 2)),
        lhs_dilation=(2, 2), dimension_numbers=("NCHW", "OIHW", "NCHW"),
        precision=hp)
    y = y + bt[None, :, None, None]
    z = jax.lax.conv_general_dilated(
        y, w1, window_strides=(1, 1), padding="VALID",
        dimension_numbers=("NCHW", "OIHW", "NCHW"), precision=hp)
    return z + b1[None, :, None, None]


def init_params(key, cin, cout):
    """PyTorch-default-style init (shapes match the nn.Module exactly)."""
    k1, k2, k3, k4 = jax.random.split(key, 4)
    bt_bound = (cin * 9) ** -0.5          # ConvTranspose2d fan_in = out_ch*3*3
    wt = jax.random.uniform(k1, (cin, cin, 3, 3), jnp.float32, -bt_bound, bt_bound)
    bt = jax.random.uniform(k2, (cin,), jnp.float32, -bt_bound, bt_bound)
    b1_bound = cin ** -0.5                # Conv2d 1x1 fan_in = in_ch
    w1 = jax.random.uniform(k3, (cout, cin, 1, 1), jnp.float32, -b1_bound, b1_bound)
    b1 = jax.random.uniform(k4, (cout,), jnp.float32, -b1_bound, b1_bound)
    return wt, bt, w1, b1


# ----------------------------------------------------------------------------
if __name__ == "__main__":
    N, Cin, Cout, H, W = 2, 64, 32, 16, 16     # matches SkyrmNet decoder usage
    kx, kp = jax.random.split(jax.random.PRNGKey(0))
    x = jax.random.normal(kx, (N, Cin, H, W), jnp.float32)
    params = init_params(kp, Cin, Cout)

    fwd = jax.jit(upsample_block_forward)
    out = jax.block_until_ready(fwd(x, params))
    assert out.shape == (N, Cout, 2 * H, 2 * W), out.shape
    assert out.dtype == jnp.float32

    ref = jax.block_until_ready(jax.jit(reference_upsample_block)(x, *params))
    # Kernel operands are bf16 (MXU-native) with f32 accumulation; the
    # reference runs at HIGHEST precision, so allow a small numerical slack.
    assert jnp.allclose(out, ref, atol=3e-2, rtol=3e-2), float(
        jnp.max(jnp.abs(out - ref)))
    print("KERNEL_OK")
</pallas_src>

<mosaic_0001>
module attributes {stable_mosaic.version = 11 : i64} {
  func.func @_fused_upsample_matmul_kernel(%arg0: i32, %arg1: memref<256x256xbf16, #tpu.memory_space<vmem>>, %arg2: memref<256x128xbf16, #tpu.memory_space<vmem>>, %arg3: memref<1x128xf32, #tpu.memory_space<vmem>>, %arg4: memref<256x128xf32, #tpu.memory_space<vmem>>) attributes {dimension_semantics = [#tpu.dimension_semantics<parallel>], iteration_bounds = array<i64: 2>, scalar_prefetch = 0 : i64, scratch_operands = 0 : i64, tpu.core_type = #tpu.core_type<tc>, window_params = [{transform_indices = @transform_0, window_bounds = array<i64: 256, 256>}, {pipeline_mode = #tpu.pipeline_mode<synchronous>, transform_indices = @transform_1, window_bounds = array<i64: 256, 128>}, {pipeline_mode = #tpu.pipeline_mode<synchronous>, transform_indices = @transform_2, window_bounds = array<i64: 1, 128>}, {transform_indices = @transform_3, window_bounds = array<i64: 256, 128>}]} {
    %c0 = arith.constant 0 : index
    %c0_0 = arith.constant 0 : index
    %0 = vector.load %arg1[%c0, %c0_0] : memref<256x256xbf16, #tpu.memory_space<vmem>>, vector<256x256xbf16>
    %c0_1 = arith.constant 0 : index
    %c0_2 = arith.constant 0 : index
    %1 = vector.load %arg2[%c0_1, %c0_2] : memref<256x128xbf16, #tpu.memory_space<vmem>>, vector<256x128xbf16>
    %cst = arith.constant dense<0.000000e+00> : vector<256x128xf32>
    %2 = tpu.matmul %0, %1, %cst {dimension_numbers = #tpu.dot_dimension_numbers<[1], [0], [0], [1], [0, 0, 1, 1], [], []>} : vector<256x256xbf16>, vector<256x128xbf16>, vector<256x128xf32> -> vector<256x128xf32>
    %c0_3 = arith.constant 0 : index
    %c0_4 = arith.constant 0 : index
    %3 = vector.load %arg3[%c0_3, %c0_4] : memref<1x128xf32, #tpu.memory_space<vmem>>, vector<1x128xf32>
    %4 = vector.broadcast %3 : vector<1x128xf32> to vector<256x128xf32>
    %5 = arith.addf %2, %4 : vector<256x128xf32>
    %c0_5 = arith.constant 0 : index
    %c0_6 = arith.constant 0 : index
    %6 = vector.load %arg4[%c0_5, %c0_6] : memref<256x128xf32, #tpu.memory_space<vmem>>, vector<256x128xf32>
    tpu.vector_store %arg4[%c0_5, %c0_6], %5 {strides = array<i32>} : memref<256x128xf32, #tpu.memory_space<vmem>>, vector<256x128xf32>,
    return
  }
  func.func @transform_0(%arg0: i32) -> (i32, i32) {
    %c0_i32 = arith.constant 0 : i32
    %c0_i32_0 = arith.constant 0 : i32
    return %arg0, %c0_i32 : i32, i32
  }
  func.func @transform_1(%arg0: i32) -> (i32, i32) {
    %c0_i32 = arith.constant 0 : i32
    %c0_i32_0 = arith.constant 0 : i32
    %c0_i32_1 = arith.constant 0 : i32
    return %c0_i32, %c0_i32_0 : i32, i32
  }
  func.func @transform_2(%arg0: i32) -> (i32, i32) {
    %c0_i32 = arith.constant 0 : i32
    %c0_i32_0 = arith.constant 0 : i32
    %c0_i32_1 = arith.constant 0 : i32
    return %c0_i32, %c0_i32_0 : i32, i32
  }
  func.func @transform_3(%arg0: i32) -> (i32, i32) {
    %c0_i32 = arith.constant 0 : i32
    %c0_i32_0 = arith.constant 0 : i32
    return %arg0, %c0_i32 : i32, i32
  }
}

</mosaic_0001>

<bundles_post_ra>
// kernel: tile.8
= control target key start
LH: loop header
LB: loop body
LE: loop exit
PB: predicated region body
PF: predicated region fallthrough
CT: control target
= control target key end

     0   :  { %s22_s0 = inlined_call_operand.vmem [shape: f32[32], index: 0, kind: input, shape index: {}]   ;;  %s23_s1 = inlined_call_operand.vmem [shape: f32[4,32], index: 1, kind: output, shape index: {}]  }
   0x1   :  { %v4_v0 = vld [vmem:[%s22_s0] ss:$0 sm:$0xff] }
   0x2   :  { %5 = vst [vmem:[%s23_s1] sm:$0xf] %v4_v0 }

// kernel: tile.9
= control target key start
LH: loop header
LB: loop body
LE: loop exit
PB: predicated region body
PF: predicated region fallthrough
CT: control target
= control target key end

     0   :  { %s37_s8 = smov 32   ;;  %s38_s9 = smov 64   ;;  %vm7_vm0 = vcmask 261120   ;;  %vm13_vm1 = vcmask 1048320   ;;  %vm19_vm2 = vcmask 785920   ;;  %vm25_vm3 = vcmask 523520   ;;  %s55_s0 = inlined_call_operand.vmem [shape: f32[4,32], index: 0, kind: input, shape index: {}]   ;;  %s56_s1 = inlined_call_operand.vmem [shape: f32[1,128], index: 1, kind: output, shape index: {}]  }
   0x1   :  { %v4_v0 = vld [vmem:[%s55_s0] sm:$0xf]  ;;  %s36_s0 = smov 96  }
   0x2   :  { %5 = vst [vmem:[#allocation1] sm:$0xf] %v4_v0 }
   0x9   :  { %v10_v1 = vld [vmem:[#allocation1 + $0x3] sm:$0x1]   ;;  %v22_v2 = vld [vmem:[#allocation1 + $0x1] sm:$0x1]   ;;  %v16_v3 = vld [vmem:[#allocation1 + $0x2] sm:$0x1]  }
   0xa   :  { %11 = vrot.lane.b32.xlu0 %v10_v1, %s36_s0  ;;  %23 = vrot.lane.b32.xlu1 %v22_v2, %s37_s8  ;;  %v6_v4 = vld [vmem:[#allocation1] sm:$0x1]  }
   0xb   :  { %8 = vst.msk [vmem:[#allocation0] sm:$0x1] %vm7_vm0, %v6_v4  }
  0x12   :  { %17 = vrot.lane.b32.xlu0 %v16_v3, %s38_s9 }
  0x7c   :  { %v12_v5 = vpop.permute.xlu0 %11   ;;  %v24_v6 = vpop.permute.xlu1 %23  }
  0x7d   :  { %14 = vst.msk [vmem:[#allocation0] sm:$0x1] %vm13_vm1, %v12_v5  }
  0x84   :  { %v18_v7 = vpop.permute.xlu0 %17  }
  0x85   :  { %20 = vst.msk [vmem:[#allocation0] sm:$0x1] %vm19_vm2, %v18_v7  }
  0x86   :  { %26 = vst.msk [vmem:[#allocation0] sm:$0x1] %vm25_vm3, %v24_v6  }
  0x8d   :  { %v29_v8 = vld [vmem:[#allocation0] sm:$0x1] }
  0x8e   :  { %32 = vst [vmem:[%s56_s1] sm:$0x1] %v29_v8 }

// kernel: upsample_block_forward.1
= control target key start
LH: loop header
LB: loop body
LE: loop exit
PB: predicated region body
PF: predicated region fallthrough
CT: control target
= control target key end

     0   :  { %s1073_s12 = smov 0   ;;  %s1282_s0 = inlined_call_operand.vmem [shape: bf16[512,256], index: 0, kind: input, shape index: {}]   ;;  %s1283_s1 = inlined_call_operand.vmem [shape: bf16[256,128], index: 1, kind: input, shape index: {}]   ;;  %s1284_s2 = inlined_call_operand.vmem [shape: f32[1,128], index: 2, kind: input, shape index: {}]   ;;  %s1285_s3 = inlined_call_operand.vmem [shape: f32[512,128], index: 3, kind: output, shape index: {}]  }
   0x1 LB: > { %s767_s13 = sadd.s32 4294967295, %s1051_s12   ;;  %p771_p0 = scmp.ge.s32.totalorder %s1051_s12, 1  ;;  %s1051_s12 = sphi %s1073_s12, %s13_s12  }
   0x2   : > { %p139_p1 = scmp.lt.s32.totalorder %s1051_s12, 3 }
   0x4   : > { %p140_p2 = pnand %p771_p0, %p139_p1 }
   0x5   : > { %s772_s26 = sshll.u32 (!%p140_p2), %s767_s13, 5 }
   0x6   : > { %143 = sbr.rel (%p140_p2) target bundleno = 300 (0x12c), region = 32  ;;  %p165_p3 = scmp.lt.s32.totalorder (!%p140_p2), %s772_s26, 63 }
   0xb   : > { %v1011_v0 = vld [vmem:[%s1283_s1 + $0x38] sm:$0xff]  ;;  %v1010_v2 = vld [vmem:[%s1283_s1 + $0x30] sm:$0xff]  ;;  %v1009_v4 = vld [vmem:[%s1283_s1 + $0x28] sm:$0xff]  ;;  %s1287_s26 = smov (!%p165_p3, %s772_s26), 63 }
   0xc   : > { %v1019_v1 = vld [vmem:[%s1283_s1 + $0x78] sm:$0xff]  ;;  %501 = vmatpush.bf16.msra.mxu0 %v1011_v0  ;;  %1020 = vmatpush.bf16.msra.mxu2 %v1011_v0  ;;  %v1018_v3 = vld [vmem:[%s1283_s1 + $0x70] sm:$0xff]  ;;  %v1017_v5 = vld [vmem:[%s1283_s1 + $0x68] sm:$0xff]  ;;  %s971_s13 = sshll.u32 %s1287_s26, 3 }
   0xd   : > { %590 = vmatpush.bf16.msra.mxu1 %v1019_v1  ;;  %1028 = vmatpush.bf16.msra.mxu3 %v1019_v1  ;;  %v1008_v6 = vld [vmem:[%s1283_s1 + $0x20] sm:$0xff]  ;;  %v1007_v8 = vld [vmem:[%s1283_s1 + $0x18] sm:$0xff]  ;;  %v1006_v10 = vld [vmem:[%s1283_s1 + $0x10] sm:$0xff]  ;;  %s1128_s18 = scalar_lea.vmem %s1282_s0, %s971_s13  ;;  %s1214_s30 = scalar_lea.vmem %s1285_s3, %s971_s13 }
   0xe   : > { %v1016_v7 = vld [vmem:[%s1283_s1 + $0x60] sm:$0xff]  ;;  %v1015_v9 = vld [vmem:[%s1283_s1 + $0x58] sm:$0xff]  ;;  %v1014_v11 = vld [vmem:[%s1283_s1 + $0x50] sm:$0xff] }
   0xf   : > { %v1005_v12 = vld [vmem:[%s1283_s1 + $0x8] sm:$0xff]  ;;  %v1004_v14 = vld [vmem:[%s1283_s1] sm:$0xff]  ;;  %v787_v28 = vld [vmem:[%s1128_s18 + $0x10] sm:$0xf] }
  0x10   : > { %502 = vmatpush.bf16.msra.mxu0 %v1010_v2  ;;  %1021 = vmatpush.bf16.msra.mxu2 %v1010_v2  ;;  %v1013_v13 = vld [vmem:[%s1283_s1 + $0x48] sm:$0xff]  ;;  %v1012_v15 = vld [vmem:[%s1283_s1 + $0x40] sm:$0xff]  ;;  %v975_v29 = vld [vmem:[%s1128_s18 + $0x14] sm:$0xf0] }
  0x11   : > { %591 = vmatpush.bf16.msra.mxu1 %v1018_v3  ;;  %1029 = vmatpush.bf16.msra.mxu3 %v1018_v3  ;;  %v779_v16 = vld [vmem:[%s1128_s18] sm:$0xf]  ;;  %v973_v17 = vld [vmem:[%s1128_s18 + $0x4] sm:$0xf0]  ;;  %v972_v20 = vld [vmem:[%s1128_s18 + $0x4] sm:$0xf]  ;;  %v788_v36 = vor.u32 %v975_v29, %v787_v28 }
  0x12   : > { %v843_v18 = vld [vmem:[%s1128_s18 + $0x80] sm:$0xf]  ;;  %v989_v19 = vld [vmem:[%s1128_s18 + $0x84] sm:$0xf0]  ;;  %v781_v21 = vld [vmem:[%s1128_s18 + $0x8] sm:$0xf0]  ;;  %v780_v24 = vor.u32 %v973_v17, %v779_v16 }
  0x13   : > { %v988_v22 = vld [vmem:[%s1128_s18 + $0x84] sm:$0xf]  ;;  %v845_v23 = vld [vmem:[%s1128_s18 + $0x88] sm:$0xf0]  ;;  %v844_v25 = vor.u32 %v989_v19, %v843_v18  ;;  %v784_v26 = vor.u32 %v972_v20, %v781_v21  ;;  %v851_v30 = vld [vmem:[%s1128_s18 + $0x90] sm:$0xf] }
  0x14   : > { %503 = vmatpush.bf16.msra.mxu0 %v1009_v4  ;;  %1022 = vmatpush.bf16.msra.mxu2 %v1009_v4  ;;  %v848_v27 = vor.u32 %v988_v22, %v845_v23  ;;  %v991_v31 = vld [vmem:[%s1128_s18 + $0x94] sm:$0xf0]  ;;  %v974_v32 = vld [vmem:[%s1128_s18 + $0x14] sm:$0xf]  ;;  %v789_v33 = vld [vmem:[%s1128_s18 + $0x18] sm:$0xf0] }
  0x15   : > { %592 = vmatpush.bf16.msra.mxu1 %v1017_v5  ;;  %1030 = vmatpush.bf16.msra.mxu3 %v1017_v5  ;;  %v990_v34 = vld [vmem:[%s1128_s18 + $0x94] sm:$0xf]  ;;  %v853_v35 = vld [vmem:[%s1128_s18 + $0x98] sm:$0xf0]  ;;  %v852_v37 = vor.u32 %v991_v31, %v851_v30  ;;  %v792_v38 = vor.u32 %v974_v32, %v789_v33  ;;  %v795_v40 = vld [vmem:[%s1128_s18 + $0x20] sm:$0xf] }
  0x16   : > { %v856_v39 = vor.u32 %v990_v34, %v853_v35  ;;  %v977_v41 = vld [vmem:[%s1128_s18 + $0x24] sm:$0xf0]  ;;  %v859_v42 = vld [vmem:[%s1128_s18 + $0xa0] sm:$0xf]  ;;  %v976_v44 = vld [vmem:[%s1128_s18 + $0x24] sm:$0xf] }
  0x17   : > { %v993_v43 = vld [vmem:[%s1128_s18 + $0xa4] sm:$0xf0]  ;;  %v797_v45 = vld [vmem:[%s1128_s18 + $0x28] sm:$0xf0]  ;;  %v992_v46 = vld [vmem:[%s1128_s18 + $0xa4] sm:$0xf]  ;;  %v796_v48 = vor.u32 %v977_v41, %v795_v40 }
  0x18   : > { %504 = vmatpush.bf16.msra.mxu0 %v1008_v6  ;;  %1023 = vmatpush.bf16.msra.mxu2 %v1008_v6  ;;  %v861_v47 = vld [vmem:[%s1128_s18 + $0xa8] sm:$0xf0]  ;;  %v860_v49 = vor.u32 %v993_v43, %v859_v42  ;;  %v800_v50 = vor.u32 %v976_v44, %v797_v45  ;;  %v803_v52 = vld [vmem:[%s1128_s18 + $0x30] sm:$0xf]  ;;  %v979_v53 = vld [vmem:[%s1128_s18 + $0x34] sm:$0xf0] }
  0x19   : > { %593 = vmatpush.bf16.msra.mxu1 %v1016_v7  ;;  %1031 = vmatpush.bf16.msra.mxu3 %v1016_v7  ;;  %v864_v51 = vor.u32 %v992_v46, %v861_v47  ;;  %v867_v54 = vld [vmem:[%s1128_s18 + $0xb0] sm:$0xf]  ;;  %v995_v55 = vld [vmem:[%s1128_s18 + $0xb4] sm:$0xf0]  ;;  %v978_v56 = vld [vmem:[%s1128_s18 + $0x34] sm:$0xf]  ;;  %v804_v60 = vor.u32 %v979_v53, %v803_v52 }
  0x1a   : > { %v805_v57 = vld [vmem:[%s1128_s18 + $0x38] sm:$0xf0]  ;;  %v994_v58 = vld [vmem:[%s1128_s18 + $0xb4] sm:$0xf]  ;;  %v868_v61 = vor.u32 %v995_v55, %v867_v54  ;;  %v811_v0 = vld [vmem:[%s1128_s18 + $0x40] sm:$0xf] }
  0x1b   : > { %v869_v59 = vld [vmem:[%s1128_s18 + $0xb8] sm:$0xf0]  ;;  %v808_v62 = vor.u32 %v978_v56, %v805_v57  ;;  %v981_v1 = vld [vmem:[%s1128_s18 + $0x44] sm:$0xf0]  ;;  %v875_v2 = vld [vmem:[%s1128_s18 + $0xc0] sm:$0xf] }
  0x1c   : > { %505 = vmatpush.bf16.msra.mxu0 %v1007_v8  ;;  %1024 = vmatpush.bf16.msra.mxu2 %v1007_v8  ;;  %v872_v63 = vor.u32 %v994_v58, %v869_v59  ;;  %v997_v3 = vld [vmem:[%s1128_s18 + $0xc4] sm:$0xf0]  ;;  %v980_v4 = vld [vmem:[%s1128_s18 + $0x44] sm:$0xf]  ;;  %v813_v5 = vld [vmem:[%s1128_s18 + $0x48] sm:$0xf0]  ;;  %v812_v8 = vor.u32 %v981_v1, %v811_v0 }
  0x1d   : > { %594 = vmatpush.bf16.msra.mxu1 %v1015_v9  ;;  %1032 = vmatpush.bf16.msra.mxu3 %v1015_v9  ;;  %v996_v6 = vld [vmem:[%s1128_s18 + $0xc4] sm:$0xf]  ;;  %v877_v7 = vld [vmem:[%s1128_s18 + $0xc8] sm:$0xf0]  ;;  %v876_v9 = vor.u32 %v997_v3, %v875_v2  ;;  %v982_v16 = vld [vmem:[%s1128_s18 + $0x54] sm:$0xf] }
  0x1e   : > { %v821_v17 = vld [vmem:[%s1128_s18 + $0x58] sm:$0xf0]  ;;  %v998_v18 = vld [vmem:[%s1128_s18 + $0xd4] sm:$0xf]  ;;  %v984_v28 = vld [vmem:[%s1128_s18 + $0x64] sm:$0xf] }
  0x1f   : > { %v885_v19 = vld [vmem:[%s1128_s18 + $0xd8] sm:$0xf0]  ;;  %v824_v22 = vor.u32 %v982_v16, %v821_v17  ;;  %v829_v29 = vld [vmem:[%s1128_s18 + $0x68] sm:$0xf0]  ;;  %v1000_v30 = vld [vmem:[%s1128_s18 + $0xe4] sm:$0xf] }
  0x20   : > { %506 = vmatpush.bf16.msra.mxu0 %v1006_v10  ;;  %1025 = vmatpush.bf16.msra.mxu2 %v1006_v10  ;;  %v816_v10 = vor.u32 %v980_v4, %v813_v5  ;;  %v888_v23 = vor.u32 %v998_v18, %v885_v19  ;;  %v893_v31 = vld [vmem:[%s1128_s18 + $0xe8] sm:$0xf0]  ;;  %v832_v34 = vor.u32 %v984_v28, %v829_v29  ;;  %v986_v40 = vld [vmem:[%s1128_s18 + $0x74] sm:$0xf]  ;;  %v837_v41 = vld [vmem:[%s1128_s18 + $0x78] sm:$0xf0] }
  0x21   : > { %595 = vmatpush.bf16.msra.mxu1 %v1014_v11  ;;  %1033 = vmatpush.bf16.msra.mxu3 %v1014_v11  ;;  %v880_v11 = vor.u32 %v996_v6, %v877_v7  ;;  %v896_v35 = vor.u32 %v1000_v30, %v893_v31  ;;  %v1002_v42 = vld [vmem:[%s1128_s18 + $0xf4] sm:$0xf]  ;;  %v901_v43 = vld [vmem:[%s1128_s18 + $0xf8] sm:$0xf0]  ;;  %v840_v46 = vor.u32 %v986_v40, %v837_v41 }
  0x22   : > { %v904_v47 = vor.u32 %v1002_v42, %v901_v43 }
  0x24   : > { %507 = vmatpush.bf16.msra.mxu0 %v1005_v12  ;;  %1026 = vmatpush.bf16.msra.mxu2 %v1005_v12  ;;  %v819_v12 = vld [vmem:[%s1128_s18 + $0x50] sm:$0xf] }
  0x25   : > { %596 = vmatpush.bf16.msra.mxu1 %v1013_v13  ;;  %1034 = vmatpush.bf16.msra.mxu3 %v1013_v13  ;;  %v983_v13 = vld [vmem:[%s1128_s18 + $0x54] sm:$0xf0] }
  0x26   : > { %v820_v20 = vor.u32 %v983_v13, %v819_v12 }
  0x28   : > { %508 = vmatpush.bf16.msra.mxu0 %v1004_v14  ;;  %1027 = vmatpush.bf16.msra.mxu2 %v1004_v14  ;;  %v883_v14 = vld [vmem:[%s1128_s18 + $0xd0] sm:$0xf] }
  0x29   : > { %597 = vmatpush.bf16.msra.mxu1 %v1012_v15  ;;  %1035 = vmatpush.bf16.msra.mxu3 %v1012_v15  ;;  %v999_v15 = vld [vmem:[%s1128_s18 + $0xd4] sm:$0xf0] }
  0x2a   : > { %v884_v21 = vor.u32 %v999_v15, %v883_v14 }
  0x2b   : > { %509 = vmatmul.bf16.vlgmr.msra.gmra.mxu0 %v780_v24  ;;  %549 = vmatmul.bf16.vlgmr.msra.gmra.mxu2 %v844_v25  ;;  %v827_v24 = vld [vmem:[%s1128_s18 + $0x60] sm:$0xf]  ;;  %v985_v25 = vld [vmem:[%s1128_s18 + $0x64] sm:$0xf0] }
  0x2c   : > { %598 = vmatmul.bf16.vlgmr.msra.gmra.mxu1 %v784_v26  ;;  %638 = vmatmul.bf16.vlgmr.msra.gmra.mxu3 %v848_v27  ;;  %v891_v26 = vld [vmem:[%s1128_s18 + $0xe0] sm:$0xf]  ;;  %v1001_v27 = vld [vmem:[%s1128_s18 + $0xe4] sm:$0xf0]  ;;  %v828_v32 = vor.u32 %v985_v25, %v827_v24 }
  0x2d   : > { %v892_v33 = vor.u32 %v1001_v27, %v891_v26 }
  0x3b   : > { %514 = vmatmul.bf16.gmra.mxu0 %v788_v36  ;;  %554 = vmatmul.bf16.gmra.mxu2 %v852_v37  ;;  %v835_v36 = vld [vmem:[%s1128_s18 + $0x70] sm:$0xf]  ;;  %v987_v37 = vld [vmem:[%s1128_s18 + $0x74] sm:$0xf0] }
  0x3c   : > { %603 = vmatmul.bf16.gmra.mxu1 %v792_v38  ;;  %643 = vmatmul.bf16.gmra.mxu3 %v856_v39  ;;  %v899_v38 = vld [vmem:[%s1128_s18 + $0xf0] sm:$0xf]  ;;  %v1003_v39 = vld [vmem:[%s1128_s18 + $0xf4] sm:$0xf0]  ;;  %v836_v44 = vor.u32 %v987_v37, %v835_v36 }
  0x3d   : > { %v900_v45 = vor.u32 %v1003_v39, %v899_v38 }
  0x4b   : > { %519 = vmatmul.bf16.gmra.mxu0 %v796_v48  ;;  %559 = vmatmul.bf16.gmra.mxu2 %v860_v49  ;;  %v1206_v48 = vld [vmem:[%s1284_s2] ss:$0 sm:$0xff] }
  0x4c   : > { %608 = vmatmul.bf16.gmra.mxu1 %v800_v50  ;;  %648 = vmatmul.bf16.gmra.mxu3 %v864_v51 }
  0x5b   : > { %524 = vmatmul.bf16.gmra.mxu0 %v804_v60  ;;  %564 = vmatmul.bf16.gmra.mxu2 %v868_v61 }
  0x5c   : > { %613 = vmatmul.bf16.gmra.mxu1 %v808_v62  ;;  %653 = vmatmul.bf16.gmra.mxu3 %v872_v63 }
  0x6b   : > { %529 = vmatmul.bf16.gmra.mxu0 %v812_v8  ;;  %569 = vmatmul.bf16.gmra.mxu2 %v876_v9 }
  0x6c   : > { %618 = vmatmul.bf16.gmra.mxu1 %v816_v10  ;;  %658 = vmatmul.bf16.gmra.mxu3 %v880_v11 }
  0x7b   : > { %534 = vmatmul.bf16.gmra.mxu0 %v820_v20  ;;  %574 = vmatmul.bf16.gmra.mxu2 %v884_v21 }
  0x7c   : > { %623 = vmatmul.bf16.gmra.mxu1 %v824_v22  ;;  %663 = vmatmul.bf16.gmra.mxu3 %v888_v23 }
  0x8b   : > { %539 = vmatmul.bf16.gmra.mxu0 %v828_v32  ;;  %579 = vmatmul.bf16.gmra.mxu2 %v892_v33 }
  0x8c   : > { %628 = vmatmul.bf16.gmra.mxu1 %v832_v34  ;;  %668 = vmatmul.bf16.gmra.mxu3 %v896_v35 }
  0x9b   : > { %544 = vmatmul.bf16.gmra.mxu0 %v836_v44  ;;  %584 = vmatmul.bf16.gmra.mxu2 %v900_v45 }
  0x9c   : > { %633 = vmatmul.bf16.gmra.mxu1 %v840_v46  ;;  %673 = vmatmul.bf16.gmra.mxu3 %v904_v47 }
  0xa8   : > { %v510_v49 = vpop.f32.mrf.mxu0 }
  0xa9   : > { %v511_v50 = vadd.f32 %v1206_v48, %v510_v49  ;;  %v599_v51 = vpop.f32.mrf.mxu1 }
  0xab   : > { %v600_v52 = vadd.f32 %v599_v51, %v511_v50 }
  0xad   : > { %679 = vst [vmem:[%s1214_s30] sm:$0xff] %v600_v52 }
  0xae   : > { %v550_v53 = vpop.f32.mrf.mxu2 }
  0xaf   : > { %v551_v54 = vadd.f32 %v1206_v48, %v550_v53  ;;  %v639_v55 = vpop.f32.mrf.mxu3 }
  0xb0   : > { %v512_v56 = vpop.f32.mrf.mxu0 }
  0xb1   : > { %v640_v57 = vadd.f32 %v639_v55, %v551_v54  ;;  %v513_v58 = vadd.f32 %v1206_v48, %v512_v56  ;;  %v601_v59 = vpop.f32.mrf.mxu1 }
  0xb3   : > { %695 = vst [vmem:[%s1214_s30 + $0x80] sm:$0xff] %v640_v57  ;;  %v602_v60 = vadd.f32 %v601_v59, %v513_v58 }
  0xb5   : > { %680 = vst [vmem:[%s1214_s30 + $0x8] sm:$0xff] %v602_v60 }
  0xb6   : > { %v552_v61 = vpop.f32.mrf.mxu2 }
  0xb7   : > { %v553_v62 = vadd.f32 %v1206_v48, %v552_v61  ;;  %v641_v63 = vpop.f32.mrf.mxu3 }
  0xb8   : > { %v515_v0 = vpop.f32.mrf.mxu0 }
  0xb9   : > { %v642_v1 = vadd.f32 %v641_v63, %v553_v62  ;;  %v516_v2 = vadd.f32 %v1206_v48, %v515_v0  ;;  %v604_v3 = vpop.f32.mrf.mxu1 }
  0xbb   : > { %696 = vst [vmem:[%s1214_s30 + $0x88] sm:$0xff] %v642_v1  ;;  %v605_v4 = vadd.f32 %v604_v3, %v516_v2 }
  0xbd   : > { %681 = vst [vmem:[%s1214_s30 + $0x10] sm:$0xff] %v605_v4 }
  0xbe   : > { %v555_v5 = vpop.f32.mrf.mxu2 }
  0xbf   : > { %v556_v6 = vadd.f32 %v1206_v48, %v555_v5  ;;  %v644_v7 = vpop.f32.mrf.mxu3 }
  0xc0   : > { %v517_v8 = vpop.f32.mrf.mxu0 }
  0xc1   : > { %v645_v9 = vadd.f32 %v644_v7, %v556_v6  ;;  %v518_v10 = vadd.f32 %v1206_v48, %v517_v8  ;;  %v606_v11 = vpop.f32.mrf.mxu1 }
  0xc3   : > { %697 = vst [vmem:[%s1214_s30 + $0x90] sm:$0xff] %v645_v9  ;;  %v607_v12 = vadd.f32 %v606_v11, %v518_v10 }
  0xc5   : > { %682 = vst [vmem:[%s1214_s30 + $0x18] sm:$0xff] %v607_v12 }
  0xc6   : > { %v557_v13 = vpop.f32.mrf.mxu2 }
  0xc7   : > { %v558_v14 = vadd.f32 %v1206_v48, %v557_v13  ;;  %v646_v15 = vpop.f32.mrf.mxu3 }
  0xc8   : > { %v520_v16 = vpop.f32.mrf.mxu0 }
  0xc9   : > { %v647_v17 = vadd.f32 %v646_v15, %v558_v14  ;;  %v521_v18 = vadd.f32 %v1206_v48, %v520_v16  ;;  %v609_v19 = vpop.f32.mrf.mxu1 }
  0xcb   : > { %698 = vst [vmem:[%s1214_s30 + $0x98] sm:$0xff] %v647_v17  ;;  %v610_v20 = vadd.f32 %v609_v19, %v521_v18 }
  0xcd   : > { %683 = vst [vmem:[%s1214_s30 + $0x20] sm:$0xff] %v610_v20 }
  0xce   : > { %v560_v21 = vpop.f32.mrf.mxu2 }
  0xcf   : > { %v561_v22 = vadd.f32 %v1206_v48, %v560_v21  ;;  %v649_v23 = vpop.f32.mrf.mxu3 }
  0xd0   : > { %v522_v24 = vpop.f32.mrf.mxu0 }
  0xd1   : > { %v650_v25 = vadd.f32 %v649_v23, %v561_v22  ;;  %v523_v26 = vadd.f32 %v1206_v48, %v522_v24  ;;  %v611_v27 = vpop.f32.mrf.mxu1 }
  0xd3   : > { %699 = vst [vmem:[%s1214_s30 + $0xa0] sm:$0xff] %v650_v25  ;;  %v612_v28 = vadd.f32 %v611_v27, %v523_v26 }
  0xd5   : > { %684 = vst [vmem:[%s1214_s30 + $0x28] sm:$0xff] %v612_v28 }
  0xd6   : > { %v562_v29 = vpop.f32.mrf.mxu2 }
  0xd7   : > { %v563_v30 = vadd.f32 %v1206_v48, %v562_v29  ;;  %v651_v31 = vpop.f32.mrf.mxu3 }
  0xd8   : > { %v525_v32 = vpop.f32.mrf.mxu0 }
  0xd9   : > { %v652_v33 = vadd.f32 %v651_v31, %v563_v30  ;;  %v526_v34 = vadd.f32 %v1206_v48, %v525_v32  ;;  %v614_v35 = vpop.f32.mrf.mxu1 }
  0xdb   : > { %700 = vst [vmem:[%s1214_s30 + $0xa8] sm:$0xff] %v652_v33  ;;  %v615_v36 = vadd.f32 %v614_v35, %v526_v34 }
  0xdd   : > { %685 = vst [vmem:[%s1214_s30 + $0x30] sm:$0xff] %v615_v36 }
  0xde   : > { %v565_v37 = vpop.f32.mrf.mxu2 }
  0xdf   : > { %v566_v38 = vadd.f32 %v1206_v48, %v565_v37  ;;  %v654_v39 = vpop.f32.mrf.mxu3 }
  0xe0   : > { %v527_v40 = vpop.f32.mrf.mxu0 }
  0xe1   : > { %v655_v41 = vadd.f32 %v654_v39, %v566_v38  ;;  %v528_v42 = vadd.f32 %v1206_v48, %v527_v40  ;;  %v616_v43 = vpop.f32.mrf.mxu1 }
  0xe3   : > { %701 = vst [vmem:[%s1214_s30 + $0xb0] sm:$0xff] %v655_v41  ;;  %v617_v44 = vadd.f32 %v616_v43, %v528_v42 }
  0xe5   : > { %686 = vst [vmem:[%s1214_s30 + $0x38] sm:$0xff] %v617_v44 }
  0xe6   : > { %v567_v45 = vpop.f32.mrf.mxu2 }
  0xe7   : > { %v568_v46 = vadd.f32 %v1206_v48, %v567_v45  ;;  %v656_v47 = vpop.f32.mrf.mxu3 }
  0xe8   : > { %v530_v49 = vpop.f32.mrf.mxu0 }
  0xe9   : > { %v657_v50 = vadd.f32 %v656_v47, %v568_v46  ;;  %v531_v51 = vadd.f32 %v1206_v48, %v530_v49  ;;  %v619_v52 = vpop.f32.mrf.mxu1 }
  0xeb   : > { %702 = vst [vmem:[%s1214_s30 + $0xb8] sm:$0xff] %v657_v50  ;;  %v620_v53 = vadd.f32 %v619_v52, %v531_v51 }
  0xed   : > { %687 = vst [vmem:[%s1214_s30 + $0x40] sm:$0xff] %v620_v53 }
  0xee   : > { %v570_v54 = vpop.f32.mrf.mxu2 }
  0xef   : > { %v571_v55 = vadd.f32 %v1206_v48, %v570_v54  ;;  %v659_v56 = vpop.f32.mrf.mxu3 }
  0xf0   : > { %v532_v57 = vpop.f32.mrf.mxu0 }
  0xf1   : > { %v660_v58 = vadd.f32 %v659_v56, %v571_v55  ;;  %v533_v59 = vadd.f32 %v1206_v48, %v532_v57  ;;  %v621_v60 = vpop.f32.mrf.mxu1 }
  0xf3   : > { %703 = vst [vmem:[%s1214_s30 + $0xc0] sm:$0xff] %v660_v58  ;;  %v622_v61 = vadd.f32 %v621_v60, %v533_v59 }
  0xf5   : > { %688 = vst [vmem:[%s1214_s30 + $0x48] sm:$0xff] %v622_v61 }
  0xf6   : > { %v572_v62 = vpop.f32.mrf.mxu2 }
  0xf7   : > { %v573_v63 = vadd.f32 %v1206_v48, %v572_v62  ;;  %v661_v0 = vpop.f32.mrf.mxu3 }
  0xf8   : > { %v535_v1 = vpop.f32.mrf.mxu0 }
  0xf9   : > { %v662_v2 = vadd.f32 %v661_v0, %v573_v63  ;;  %v536_v3 = vadd.f32 %v1206_v48, %v535_v1  ;;  %v624_v4 = vpop.f32.mrf.mxu1 }
  0xfb   : > { %704 = vst [vmem:[%s1214_s30 + $0xc8] sm:$0xff] %v662_v2  ;;  %v625_v5 = vadd.f32 %v624_v4, %v536_v3 }
  0xfd   : > { %689 = vst [vmem:[%s1214_s30 + $0x50] sm:$0xff] %v625_v5 }
  0xfe   : > { %v575_v6 = vpop.f32.mrf.mxu2 }
  0xff   : > { %v576_v7 = vadd.f32 %v1206_v48, %v575_v6  ;;  %v664_v8 = vpop.f32.mrf.mxu3 }
 0x100   : > { %v537_v9 = vpop.f32.mrf.mxu0 }
 0x101   : > { %v665_v10 = vadd.f32 %v664_v8, %v576_v7  ;;  %v538_v11 = vadd.f32 %v1206_v48, %v537_v9  ;;  %v626_v12 = vpop.f32.mrf.mxu1 }
 0x103   : > { %705 = vst [vmem:[%s1214_s30 + $0xd0] sm:$0xff] %v665_v10  ;;  %v627_v13 = vadd.f32 %v626_v12, %v538_v11 }
 0x105   : > { %690 = vst [vmem:[%s1214_s30 + $0x58] sm:$0xff] %v627_v13 }
 0x106   : > { %v577_v14 = vpop.f32.mrf.mxu2 }
 0x107   : > { %v578_v15 = vadd.f32 %v1206_v48, %v577_v14  ;;  %v666_v16 = vpop.f32.mrf.mxu3 }
 0x108   : > { %v540_v17 = vpop.f32.mrf.mxu0 }
 0x109   : > { %v667_v18 = vadd.f32 %v666_v16, %v578_v15  ;;  %v541_v19 = vadd.f32 %v1206_v48, %v540_v17  ;;  %v629_v20 = vpop.f32.mrf.mxu1 }
 0x10b   : > { %706 = vst [vmem:[%s1214_s30 + $0xd8] sm:$0xff] %v667_v18  ;;  %v630_v21 = vadd.f32 %v629_v20, %v541_v19 }
 0x10d   : > { %691 = vst [vmem:[%s1214_s30 + $0x60] sm:$0xff] %v630_v21 }
 0x10e   : > { %v580_v22 = vpop.f32.mrf.mxu2 }
 0x10f   : > { %v581_v23 = vadd.f32 %v1206_v48, %v580_v22  ;;  %v669_v24 = vpop.f32.mrf.mxu3 }
 0x110   : > { %v542_v25 = vpop.f32.mrf.mxu0 }
 0x111   : > { %v670_v26 = vadd.f32 %v669_v24, %v581_v23  ;;  %v543_v27 = vadd.f32 %v1206_v48, %v542_v25  ;;  %v631_v28 = vpop.f32.mrf.mxu1 }
 0x113   : > { %707 = vst [vmem:[%s1214_s30 + $0xe0] sm:$0xff] %v670_v26  ;;  %v632_v29 = vadd.f32 %v631_v28, %v543_v27 }
 0x115   : > { %692 = vst [vmem:[%s1214_s30 + $0x68] sm:$0xff] %v632_v29 }
 0x116   : > { %v582_v30 = vpop.f32.mrf.mxu2 }
 0x117   : > { %v583_v31 = vadd.f32 %v1206_v48, %v582_v30  ;;  %v671_v32 = vpop.f32.mrf.mxu3 }
 0x118   : > { %v545_v33 = vpop.f32.mrf.mxu0 }
 0x119   : > { %v672_v34 = vadd.f32 %v671_v32, %v583_v31  ;;  %v546_v35 = vadd.f32 %v1206_v48, %v545_v33  ;;  %v634_v36 = vpop.f32.mrf.mxu1 }
 0x11b   : > { %708 = vst [vmem:[%s1214_s30 + $0xe8] sm:$0xff] %v672_v34  ;;  %v635_v37 = vadd.f32 %v634_v36, %v546_v35 }
 0x11d   : > { %693 = vst [vmem:[%s1214_s30 + $0x70] sm:$0xff] %v635_v37 }
 0x11e   : > { %v585_v38 = vpop.f32.mrf.mxu2 }
 0x11f   : > { %v586_v39 = vadd.f32 %v1206_v48, %v585_v38  ;;  %v674_v40 = vpop.f32.mrf.mxu3 }
 0x120   : > { %v547_v41 = vpop.f32.mrf.mxu0 }
 0x121   : > { %v675_v42 = vadd.f32 %v674_v40, %v586_v39  ;;  %v548_v43 = vadd.f32 %v1206_v48, %v547_v41  ;;  %v636_v44 = vpop.f32.mrf.mxu1 }
 0x123   : > { %709 = vst [vmem:[%s1214_s30 + $0xf0] sm:$0xff] %v675_v42  ;;  %v637_v45 = vadd.f32 %v636_v44, %v548_v43 }
 0x125   : > { %694 = vst [vmem:[%s1214_s30 + $0x78] sm:$0xff] %v637_v45 }
 0x126   : > { %v587_v46 = vpop.f32.mrf.mxu2 }
 0x127   : > { %v588_v47 = vadd.f32 %v1206_v48, %v587_v46  ;;  %v676_v49 = vpop.f32.mrf.mxu3 }
 0x129   : > { %v677_v50 = vadd.f32 %v676_v49, %v588_v47 }
 0x12b   : > { %710 = vst [vmem:[%s1214_s30 + $0xf8] sm:$0xff] %v677_v50 }
 0x12c PF: > { %s13_s12 = sadd.s32 1, %s1051_s12  }
 0x12d   : > { %p10_p4 = scmp.ge.s32.totalorder %s13_s12, 4  }
 0x12f   :  { %12 = sbr.rel (!%p10_p4) target bundleno = 1 (0x1), region = 62 }

</bundles_post_ra>
